<compile_context>
chip_gen: v7x
topology: tpu7x:2x2x1
jax: 0.10.0
libtpu: 0.0.40
codegen_flags: <defaults>
</compile_context>

<pallas_src>
import numpy as np
import jax
import jax.numpy as jnp
from jax.experimental import pallas as pl
from jax.experimental.pallas import tpu as pltpu


def _nearest_indices(in_size: int, out_size: int) -> np.ndarray:
    # PyTorch F.interpolate(mode='nearest'): src = floor(dst * in / out)
    scale = in_size / out_size
    idx = np.floor(np.arange(out_size) * scale).astype(np.int64)
    return np.minimum(idx, in_size - 1)


def _make_downsample_kernel(row_idx, col_idx):
    row_idx = tuple(int(i) for i in row_idx)
    col_idx = tuple(int(j) for j in col_idx)

    def kernel(x_ref, o_ref):
        # x_ref: (Bt, H, W) input planes; o_ref: (Bt, out_h, out_w).
        # Static gather: only the selected source rows are ever loaded from
        # the VMEM block; columns are re-packed lane-dense with static slices.
        rows = jnp.concatenate(
            [x_ref[:, i:i + 1, :] for i in row_idx], axis=1)       # (Bt, out_h, W)
        o_ref[...] = jnp.concatenate(
            [rows[:, :, j:j + 1] for j in col_idx], axis=2)        # (Bt, out_h, out_w)

    return kernel


def _vmem_capacity_bytes() -> int:
    try:
        cap = getattr(pltpu.get_tpu_info(), "vmem_capacity_bytes", None)
        if cap:
            return int(cap)
    except Exception:
        pass
    return 64 * 1024 * 1024  # conservative default (v7x per-TC VMEM)


def downsample2d(x: jax.Array, mode: str = "nearest", scale: int = 4) -> jax.Array:
    assert mode == "nearest", "only nearest mode is implemented"
    n, c, h, w = x.shape
    out_h = h // scale + 1
    out_w = w // scale + 1
    b = n * c
    itemsize = np.dtype(x.dtype).itemsize

    row_idx = _nearest_indices(h, out_h)
    col_idx = _nearest_indices(w, out_w)

    # ---- generation-aware block sizing -------------------------------------
    vmem_cap = _vmem_capacity_bytes()
    if vmem_cap >= 100 * 1024 * 1024:          # v5e / v6e: 128 MiB VMEM
        vmem_limit = 96 * 1024 * 1024
        block_budget = 24 * 1024 * 1024
    else:                                      # v7x: 64 MiB VMEM per TC
        vmem_limit = 48 * 1024 * 1024
        block_budget = 10 * 1024 * 1024

    # Per-batch-row footprint: input plane + stacked-rows intermediate +
    # gathered value + output plane.  Double-buffered in/out blocks at this
    # budget stay well below vmem_limit on every generation.
    bytes_per_row = itemsize * (h * w + out_h * w + 2 * out_h * out_w)
    bt_max = max(1, block_budget // bytes_per_row)

    # Sublane packing: 8 rows/vreg for 32-bit, 16 for bf16/f16, 32 for 8-bit.
    align = 8 * max(1, 4 // itemsize)

    if bt_max >= b:
        bt = b
        if b >= 2 * align:
            # >=2 grid steps so both v7x TensorCores get work; the extra step
            # costs ~0.35us on single-TC v5e/v6e (negligible for this op).
            bt = min(b, (((b + 1) // 2 + align - 1) // align) * align)
    else:
        bt = max(align, (bt_max // align) * align)
        bt = min(bt, b)

    grid = (pl.cdiv(b, bt),)

    x_planes = x.reshape(b, h, w)   # free contiguous view: (N*C, H, W)

    out = pl.pallas_call(
        _make_downsample_kernel(row_idx, col_idx),
        out_shape=jax.ShapeDtypeStruct((b, out_h, out_w), x.dtype),
        grid_spec=pltpu.PrefetchScalarGridSpec(
            num_scalar_prefetch=0,
            grid=grid,
            in_specs=[pl.BlockSpec((bt, h, w), lambda i: (i, 0, 0))],
            out_specs=pl.BlockSpec((bt, out_h, out_w), lambda i: (i, 0, 0)),
        ),
        compiler_params=pltpu.CompilerParams(
            dimension_semantics=("parallel",),
            vmem_limit_bytes=vmem_limit,
        ),
    )(x_planes)

    return out.reshape(n, c, out_h, out_w)


def _reference(x: jax.Array, scale: int = 4) -> jax.Array:
    # Pure-JAX reference with the same PyTorch nearest-index convention.
    n, c, h, w = x.shape
    out_h = h // scale + 1
    out_w = w // scale + 1
    ri = np.asarray(_nearest_indices(h, out_h))
    ci = np.asarray(_nearest_indices(w, out_w))
    return x[:, :, ri, :][:, :, :, ci]


if __name__ == "__main__":
    key = jax.random.PRNGKey(0)
    x = jax.random.normal(key, (2, 4, 16, 16), dtype=jnp.float32)

    out = downsample2d(x, mode="nearest", scale=4)
    out = jax.block_until_ready(out)

    ref = _reference(x, scale=4)
    assert out.shape == (2, 4, 5, 5), out.shape
    np.testing.assert_allclose(np.asarray(out), np.asarray(ref), rtol=0, atol=0)

    print("KERNEL_OK")
</pallas_src>

<mosaic_0001>
module attributes {stable_mosaic.version = 11 : i64} {
  func.func @kernel(%arg0: i32, %arg1: memref<8x16x16xf32, #tpu.memory_space<vmem>>, %arg2: memref<8x5x5xf32, #tpu.memory_space<vmem>>) attributes {dimension_semantics = [#tpu.dimension_semantics<parallel>], iteration_bounds = array<i64: 1>, scalar_prefetch = 0 : i64, scratch_operands = 0 : i64, tpu.core_type = #tpu.core_type<tc>, window_params = [{transform_indices = @transform_0, window_bounds = array<i64: 8, 16, 16>}, {transform_indices = @transform_1, window_bounds = array<i64: 8, 5, 5>}]} {
    %c0 = arith.constant 0 : index
    %c0_0 = arith.constant 0 : index
    %c0_1 = arith.constant 0 : index
    %0 = vector.load %arg1[%c0, %c0_0, %c0_1] : memref<8x16x16xf32, #tpu.memory_space<vmem>>, vector<8x1x16xf32>
    %c0_2 = arith.constant 0 : index
    %c3 = arith.constant 3 : index
    %c0_3 = arith.constant 0 : index
    %1 = vector.load %arg1[%c0_2, %c3, %c0_3] : memref<8x16x16xf32, #tpu.memory_space<vmem>>, vector<8x1x16xf32>
    %c0_4 = arith.constant 0 : index
    %c6 = arith.constant 6 : index
    %c0_5 = arith.constant 0 : index
    %2 = vector.load %arg1[%c0_4, %c6, %c0_5] : memref<8x16x16xf32, #tpu.memory_space<vmem>>, vector<8x1x16xf32>
    %c0_6 = arith.constant 0 : index
    %c9 = arith.constant 9 : index
    %c0_7 = arith.constant 0 : index
    %3 = vector.load %arg1[%c0_6, %c9, %c0_7] : memref<8x16x16xf32, #tpu.memory_space<vmem>>, vector<8x1x16xf32>
    %c0_8 = arith.constant 0 : index
    %c12 = arith.constant 12 : index
    %c0_9 = arith.constant 0 : index
    %4 = vector.load %arg1[%c0_8, %c12, %c0_9] : memref<8x16x16xf32, #tpu.memory_space<vmem>>, vector<8x1x16xf32>
    %5 = tpu.concatenate %0, %1, %2, %3, %4 in 1 : vector<8x1x16xf32>, vector<8x1x16xf32>, vector<8x1x16xf32>, vector<8x1x16xf32>, vector<8x1x16xf32> -> vector<8x5x16xf32>
    %6 = vector.extract_strided_slice %5 {offsets = [0, 0, 0], sizes = [8, 5, 1], strides = [1, 1, 1]} : vector<8x5x16xf32> to vector<8x5x1xf32>
    %7 = vector.extract_strided_slice %5 {offsets = [0, 0, 3], sizes = [8, 5, 1], strides = [1, 1, 1]} : vector<8x5x16xf32> to vector<8x5x1xf32>
    %8 = vector.extract_strided_slice %5 {offsets = [0, 0, 6], sizes = [8, 5, 1], strides = [1, 1, 1]} : vector<8x5x16xf32> to vector<8x5x1xf32>
    %9 = vector.extract_strided_slice %5 {offsets = [0, 0, 9], sizes = [8, 5, 1], strides = [1, 1, 1]} : vector<8x5x16xf32> to vector<8x5x1xf32>
    %10 = vector.extract_strided_slice %5 {offsets = [0, 0, 12], sizes = [8, 5, 1], strides = [1, 1, 1]} : vector<8x5x16xf32> to vector<8x5x1xf32>
    %11 = tpu.concatenate %6, %7, %8, %9, %10 in 2 : vector<8x5x1xf32>, vector<8x5x1xf32>, vector<8x5x1xf32>, vector<8x5x1xf32>, vector<8x5x1xf32> -> vector<8x5x5xf32>
    %c0_10 = arith.constant 0 : index
    %c0_11 = arith.constant 0 : index
    %c0_12 = arith.constant 0 : index
    %12 = vector.load %arg2[%c0_10, %c0_11, %c0_12] : memref<8x5x5xf32, #tpu.memory_space<vmem>>, vector<8x5x5xf32>
    tpu.vector_store %arg2[%c0_10, %c0_11, %c0_12], %11 {strides = array<i32>} : memref<8x5x5xf32, #tpu.memory_space<vmem>>, vector<8x5x5xf32>,
    return
  }
  func.func @transform_0(%arg0: i32) -> (i32, i32, i32) {
    %c0_i32 = arith.constant 0 : i32
    %c0_i32_0 = arith.constant 0 : i32
    %c0_i32_1 = arith.constant 0 : i32
    return %arg0, %c0_i32, %c0_i32_0 : i32, i32, i32
  }
  func.func @transform_1(%arg0: i32) -> (i32, i32, i32) {
    %c0_i32 = arith.constant 0 : i32
    %c0_i32_0 = arith.constant 0 : i32
    %c0_i32_1 = arith.constant 0 : i32
    return %arg0, %c0_i32, %c0_i32_0 : i32, i32, i32
  }
}

</mosaic_0001>

<bundles_post_ra>
// kernel: tpu_custom_call.1
= control target key start
LH: loop header
LB: loop body
LE: loop exit
PB: predicated region body
PF: predicated region fallthrough
CT: control target
= control target key end

     0   :  { %6 = vsyncpa [#allocation3], 0  ;;  %s379_s6 = smov [#allocation2]   ;;  %s568_s0 = inlined_call_operand.hbm [shape: f32[8,16,16], index: 0, kind: input, shape index: {}]   ;;  %s569_s1 = inlined_call_operand.vmem [shape: f32[8,5,5], index: 1, kind: output, shape index: {}]  }
   0x1   :  { %s12_s7 = sshll.u32 %s379_s6, 4  ;;  %s355_s10 = scalar_lea.hbm %s568_s0, 2048  ;;  %s13_s7 = int_to_ptr.vmem [resolvable:$true] %s12_s7 }
   0x2   :  { %p356_p0 = scmp.ne.s32.totalorder %s568_s0, %s355_s10  ;;  %p359_p1 = scmp.lt.u32.totalorder %s355_s10, %s568_s0 }
   0x4   :  { %p361_p2 = pnand %p359_p1, %p356_p0 }
   0x6   :  { %364 = shalt.err (!%p361_p2)
}
   0x7   :  { %s365_s15 = scalar_lea.vmem %s13_s7, 2048  ;;  %p370_p4 = scmp.lt.s32.totalorder %s13_s7, %s13_s7 }
   0x8   :  { %p366_p3 = scmp.ne.s32.totalorder %s13_s7, %s365_s15  ;;  %p371_p5 = scmp.lt.s32.totalorder %s365_s15, %s365_s15 }
   0xa   :  { %p372_p6 = por %p371_p5, %p370_p4 }
   0xc   :  { %p373_p7 = pnand %p372_p6, %p366_p3 }
   0xe   :  { %376 = shalt.err (!%p373_p7)
}
   0xf   :  { %s380_s16 = smov 128   ;;  %s381_s17 = smov 8  }
  0x10   :  { %18 = dma.hbm_to_vmem [thread:$0]  %s568_s0, 2048, %s13_s7, [#allocation3], %s380_s16, %s380_s16, %s381_s17  }
  0x11   :  { %377 = dma.done.wait [#allocation3], 2048  }
  0x12   :  { %378 = vsyncadd [#allocation3], 4294965248  ;;  %vm158_vm0 = vcmask 1040384   ;;  %vm167_vm1 = vcmask 1041408   ;;  %vm176_vm2 = vcmask 1042432   ;;  %vm185_vm3 = vcmask 1043456  }
  0x13   :  { %v24_v0 = vld [vmem:[#allocation2 + $0x20] sm:$0x1]  ;;  %v32_v1 = vld [vmem:[#allocation2 + $0x23] sm:$0x1]  ;;  %v40_v2 = vld [vmem:[#allocation2 + $0x26] sm:$0x1] }
  0x14   :  { %v48_v3 = vld [vmem:[#allocation2 + $0x29] sm:$0x1]  ;;  %v56_v4 = vld [vmem:[#allocation2 + $0x2c] sm:$0x1]  ;;  %v72_v5 = vrot.slane %v32_v1, 7  ;;  %v96_v6 = vrot.slane %v40_v2, 6 }
  0x15   :  { %v120_v7 = vrot.slane %v48_v3, 5  ;;  %v144_v8 = vrot.slane %v56_v4, 4  ;;  %v22_v9 = vld [vmem:[#allocation2] sm:$0x1]  ;;  %v30_v10 = vld [vmem:[#allocation2 + $0x3] sm:$0x1] }
  0x16   :  { %v161_v11 = vsel %vm158_vm0, %v24_v0, %v72_v5  ;;  %v38_v12 = vld [vmem:[#allocation2 + $0x6] sm:$0x1]  ;;  %v46_v13 = vld [vmem:[#allocation2 + $0x9] sm:$0x1]  ;;  %v54_v14 = vld [vmem:[#allocation2 + $0xc] sm:$0x1] }
  0x17   :  { %v170_v15 = vsel %vm167_vm1, %v161_v11, %v96_v6  ;;  %v70_v16 = vrot.slane %v30_v10, 7  ;;  %v94_v17 = vrot.slane %v38_v12, 6  ;;  %v118_v18 = vrot.slane %v46_v13, 5  ;;  %v25_v19 = vld [vmem:[#allocation2 + $0x30] sm:$0x1]  ;;  %s382_s0 = smov 126  }
  0x18   :  { %v179_v20 = vsel %vm176_vm2, %v170_v15, %v120_v7  ;;  %v142_v21 = vrot.slane %v54_v14, 4  ;;  %v33_v22 = vld [vmem:[#allocation2 + $0x33] sm:$0x1]  ;;  %v41_v23 = vld [vmem:[#allocation2 + $0x36] sm:$0x1]  ;;  %s383_s20 = smov 124  }
  0x19   :  { %v412_v24 = vsel %vm185_vm3, %v179_v20, %v144_v8  ;;  %v159_v25 = vsel %vm158_vm0, %v22_v9, %v70_v16  ;;  %v49_v26 = vld [vmem:[#allocation2 + $0x39] sm:$0x1]  ;;  %v57_v27 = vld [vmem:[#allocation2 + $0x3c] sm:$0x1]  ;;  %v73_v28 = vrot.slane %v33_v22, 7  ;;  %v97_v29 = vrot.slane %v41_v23, 6 }
  0x1a   :  { %206 = vrot.lane.b32.xlu1 %v412_v24, %s382_s0  ;;  %v168_v30 = vsel %vm167_vm1, %v159_v25, %v94_v17  ;;  %v121_v31 = vrot.slane %v49_v26, 5  ;;  %v145_v32 = vrot.slane %v57_v27, 4  ;;  %v23_v33 = vld [vmem:[#allocation2 + $0x10] sm:$0x1]  ;;  %v31_v34 = vld [vmem:[#allocation2 + $0x13] sm:$0x1] }
  0x1b   :  { %v177_v35 = vsel %vm176_vm2, %v168_v30, %v118_v18  ;;  %v162_v36 = vsel %vm158_vm0, %v25_v19, %v73_v28  ;;  %v39_v37 = vld [vmem:[#allocation2 + $0x16] sm:$0x1]  ;;  %v47_v38 = vld [vmem:[#allocation2 + $0x19] sm:$0x1]  ;;  %v55_v39 = vld [vmem:[#allocation2 + $0x1c] sm:$0x1] }
  0x1c   :  { %v421_v40 = vsel %vm185_vm3, %v177_v35, %v142_v21  ;;  %v171_v41 = vsel %vm167_vm1, %v162_v36, %v97_v29  ;;  %v71_v42 = vrot.slane %v31_v34, 7  ;;  %v95_v43 = vrot.slane %v39_v37, 6  ;;  %v27_v44 = vld [vmem:[#allocation2 + $0x50] sm:$0x1]  ;;  %v35_v45 = vld [vmem:[#allocation2 + $0x53] sm:$0x1] }
  0x1d   :  { %202 = vrot.lane.b32.xlu0 %v421_v40, %s382_s0  ;;  %v180_v46 = vsel %vm176_vm2, %v171_v41, %v121_v31  ;;  %v119_v47 = vrot.slane %v47_v38, 5  ;;  %v143_v48 = vrot.slane %v55_v39, 4  ;;  %v43_v49 = vld [vmem:[#allocation2 + $0x56] sm:$0x1]  ;;  %v51_v50 = vld [vmem:[#allocation2 + $0x59] sm:$0x1] }
  0x1e   :  { %v428_v51 = vsel %vm185_vm3, %v180_v46, %v145_v32  ;;  %v160_v52 = vsel %vm158_vm0, %v23_v33, %v71_v42  ;;  %v59_v53 = vld [vmem:[#allocation2 + $0x5c] sm:$0x1]  ;;  %v75_v54 = vrot.slane %v35_v45, 7  ;;  %v99_v55 = vrot.slane %v43_v49, 6  ;;  %v26_v56 = vld [vmem:[#allocation2 + $0x40] sm:$0x1] }
  0x1f   :  { %208 = vrot.lane.b32.xlu1 %v428_v51, %s382_s0  ;;  %v169_v57 = vsel %vm167_vm1, %v160_v52, %v95_v43  ;;  %v123_v58 = vrot.slane %v51_v50, 5  ;;  %v147_v59 = vrot.slane %v59_v53, 4  ;;  %v34_v60 = vld [vmem:[#allocation2 + $0x43] sm:$0x1]  ;;  %v42_v61 = vld [vmem:[#allocation2 + $0x46] sm:$0x1] }
  0x20   :  { %v178_v62 = vsel %vm176_vm2, %v169_v57, %v119_v47  ;;  %v164_v63 = vsel %vm158_vm0, %v27_v44, %v75_v54  ;;  %v50_v0 = vld [vmem:[#allocation2 + $0x49] sm:$0x1]  ;;  %v58_v1 = vld [vmem:[#allocation2 + $0x4c] sm:$0x1]  ;;  %v74_v2 = vrot.slane %v34_v60, 7  ;;  %v98_v3 = vrot.slane %v42_v61, 6 }
  0x21   :  { %v437_v4 = vsel %vm185_vm3, %v178_v62, %v143_v48  ;;  %v173_v5 = vsel %vm167_vm1, %v164_v63, %v99_v55  ;;  %v122_v6 = vrot.slane %v50_v0, 5  ;;  %v146_v7 = vrot.slane %v58_v1, 4  ;;  %v29_v8 = vld [vmem:[#allocation2 + $0x70] sm:$0x1]  ;;  %v37_v9 = vld [vmem:[#allocation2 + $0x73] sm:$0x1] }
  0x22   :  { %204 = vrot.lane.b32.xlu0 %v437_v4, %s382_s0  ;;  %v182_v10 = vsel %vm176_vm2, %v173_v5, %v123_v58  ;;  %v163_v11 = vsel %vm158_vm0, %v26_v56, %v74_v2  ;;  %v45_v12 = vld [vmem:[#allocation2 + $0x76] sm:$0x1]  ;;  %v53_v13 = vld [vmem:[#allocation2 + $0x79] sm:$0x1]  ;;  %v61_v14 = vld [vmem:[#allocation2 + $0x7c] sm:$0x1] }
  0x23   :  { %v445_v15 = vsel %vm185_vm3, %v182_v10, %v147_v59  ;;  %v172_v16 = vsel %vm167_vm1, %v163_v11, %v98_v3  ;;  %v77_v17 = vrot.slane %v37_v9, 7  ;;  %v101_v18 = vrot.slane %v45_v12, 6  ;;  %v28_v19 = vld [vmem:[#allocation2 + $0x60] sm:$0x1]  ;;  %v36_v20 = vld [vmem:[#allocation2 + $0x63] sm:$0x1] }
  0x24   :  { %212 = vrot.lane.b32.xlu1 %v445_v15, %s382_s0  ;;  %v181_v21 = vsel %vm176_vm2, %v172_v16, %v122_v6  ;;  %v125_v22 = vrot.slane %v53_v13, 5  ;;  %v149_v23 = vrot.slane %v61_v14, 4  ;;  %v44_v25 = vld [vmem:[#allocation2 + $0x66] sm:$0x1]  ;;  %v52_v26 = vld [vmem:[#allocation2 + $0x69] sm:$0x1] }
  0x25   :  { %v452_v27 = vsel %vm185_vm3, %v181_v21, %v146_v7  ;;  %v166_v28 = vsel %vm158_vm0, %v29_v8, %v77_v17  ;;  %v60_v29 = vld [vmem:[#allocation2 + $0x6c] sm:$0x1]  ;;  %v76_v30 = vrot.slane %v36_v20, 7  ;;  %v100_v31 = vrot.slane %v44_v25, 6  ;;  %s384_s21 = smov 122   ;;  %s385_s22 = smov 120  }
  0x26   :  { %210 = vrot.lane.b32.xlu0 %v452_v27, %s382_s0  ;;  %v175_v32 = vsel %vm167_vm1, %v166_v28, %v101_v18  ;;  %v124_v33 = vrot.slane %v52_v26, 5  ;;  %v148_v34 = vrot.slane %v60_v29, 4  ;;  %vm307_vm4 = vcmask 15360  }
  0x27   :  { %v184_v35 = vsel %vm176_vm2, %v175_v32, %v125_v22  ;;  %v165_v36 = vsel %vm158_vm0, %v28_v19, %v76_v30  ;;  %vm298_vm5 = vcmask 7168   ;;  %vm316_vm6 = vcmask 23552  }
  0x28   :  { %v461_v37 = vsel %vm185_vm3, %v184_v35, %v149_v23  ;;  %v174_v38 = vsel %vm167_vm1, %v165_v36, %v100_v31  ;;  %vm325_vm7 = vcmask 31744   ;;  %vm334_vm8 = vcmask 36864  }
  0x29   :  { %216 = vrot.lane.b32.xlu1 %v461_v37, %s382_s0  ;;  %v183_v39 = vsel %vm176_vm2, %v174_v38, %v124_v33 }
  0x2a   :  { %v468_v41 = vsel %vm185_vm3, %v183_v39, %v148_v34 }
  0x2b   :  { %214 = vrot.lane.b32.xlu0 %v468_v41, %s382_s0 }
  0x2d   :  { %228 = vrot.lane.b32.xlu1 %v437_v4, %s383_s20 }
  0x2f   :  { %226 = vrot.lane.b32.xlu0 %v421_v40, %s383_s20 }
  0x31   :  { %232 = vrot.lane.b32.xlu1 %v428_v51, %s383_s20 }
  0x33   :  { %230 = vrot.lane.b32.xlu0 %v412_v24, %s383_s20 }
  0x35   :  { %236 = vrot.lane.b32.xlu1 %v445_v15, %s383_s20 }
  0x37   :  { %234 = vrot.lane.b32.xlu0 %v452_v27, %s383_s20 }
  0x39   :  { %240 = vrot.lane.b32.xlu1 %v461_v37, %s383_s20 }
  0x3b   :  { %238 = vrot.lane.b32.xlu0 %v468_v41, %s383_s20 }
  0x3d   :  { %252 = vrot.lane.b32.xlu1 %v437_v4, %s384_s21 }
  0x3f   :  { %250 = vrot.lane.b32.xlu0 %v421_v40, %s384_s21 }
  0x41   :  { %256 = vrot.lane.b32.xlu1 %v428_v51, %s384_s21 }
  0x43   :  { %254 = vrot.lane.b32.xlu0 %v412_v24, %s384_s21 }
  0x45   :  { %260 = vrot.lane.b32.xlu1 %v445_v15, %s384_s21 }
  0x47   :  { %258 = vrot.lane.b32.xlu0 %v452_v27, %s384_s21 }
  0x49   :  { %264 = vrot.lane.b32.xlu1 %v461_v37, %s384_s21 }
  0x4b   :  { %262 = vrot.lane.b32.xlu0 %v468_v41, %s384_s21 }
  0x4d   :  { %276 = vrot.lane.b32.xlu1 %v437_v4, %s385_s22 }
  0x4f   :  { %274 = vrot.lane.b32.xlu0 %v421_v40, %s385_s22 }
  0x51   :  { %280 = vrot.lane.b32.xlu1 %v428_v51, %s385_s22 }
  0x53   :  { %278 = vrot.lane.b32.xlu0 %v412_v24, %s385_s22 }
  0x55   :  { %284 = vrot.lane.b32.xlu1 %v445_v15, %s385_s22 }
  0x57   :  { %282 = vrot.lane.b32.xlu0 %v452_v27, %s385_s22 }
  0x59   :  { %288 = vrot.lane.b32.xlu1 %v461_v37, %s385_s22 }
  0x5b   :  { %286 = vrot.lane.b32.xlu0 %v468_v41, %s385_s22 }
  0x8c   :  { %v207_v42 = vpop.permute.xlu1 %206 }
  0x8d   :  { %v301_v14 = vsel %vm298_vm5, %v412_v24, %v207_v42 }
  0x8f   :  { %v203_v43 = vpop.permute.xlu0 %202 }
  0x90   :  { %v299_v6 = vsel %vm298_vm5, %v421_v40, %v203_v43 }
  0x91   :  { %v209_v44 = vpop.permute.xlu1 %208 }
  0x92   :  { %v302_v11 = vsel %vm298_vm5, %v428_v51, %v209_v44 }
  0x94   :  { %v205_v45 = vpop.permute.xlu0 %204 }
  0x95   :  { %v300_v2 = vsel %vm298_vm5, %v437_v4, %v205_v45 }
  0x96   :  { %v213_v46 = vpop.permute.xlu1 %212 }
  0x97   :  { %v304_v19 = vsel %vm298_vm5, %v445_v15, %v213_v46 }
  0x98   :  { %v211_v47 = vpop.permute.xlu0 %210 }
  0x99   :  { %v303_v23 = vsel %vm298_vm5, %v452_v27, %v211_v47 }
  0x9b   :  { %v217_v48 = vpop.permute.xlu1 %216 }
  0x9c   :  { %v306_v29 = vsel %vm298_vm5, %v461_v37, %v217_v48 }
  0x9d   :  { %v215_v49 = vpop.permute.xlu0 %214 }
  0x9e   :  { %v305_v33 = vsel %vm298_vm5, %v468_v41, %v215_v49 }
  0x9f   :  { %v229_v50 = vpop.permute.xlu1 %228 }
  0xa0   :  { %v309_v5 = vsel %vm307_vm4, %v300_v2, %v229_v50 }
  0xa1   :  { %v227_v52 = vpop.permute.xlu0 %226 }
  0xa2   :  { %v308_v9 = vsel %vm307_vm4, %v299_v6, %v227_v52 }
  0xa3   :  { %v233_v53 = vpop.permute.xlu1 %232 }
  0xa4   :  { %v311_v40 = vsel %vm307_vm4, %v302_v11, %v233_v53 }
  0xa5   :  { %v231_v54 = vpop.permute.xlu0 %230 }
  0xa6   :  { %v310_v17 = vsel %vm307_vm4, %v301_v14, %v231_v54 }
  0xa7   :  { %v237_v55 = vpop.permute.xlu1 %236 }
  0xa8   :  { %v313_v21 = vsel %vm307_vm4, %v304_v19, %v237_v55 }
  0xa9   :  { %v235_v56 = vpop.permute.xlu0 %234 }
  0xaa   :  { %v312_v26 = vsel %vm307_vm4, %v303_v23, %v235_v56 }
  0xab   :  { %v241_v57 = vpop.permute.xlu1 %240 }
  0xac   :  { %v315_v31 = vsel %vm307_vm4, %v306_v29, %v241_v57 }
  0xad   :  { %v239_v58 = vpop.permute.xlu0 %238 }
  0xae   :  { %v314_v36 = vsel %vm307_vm4, %v305_v33, %v239_v58 }
  0xaf   :  { %v253_v59 = vpop.permute.xlu1 %252 }
  0xb0   :  { %v318_v7 = vsel %vm316_vm6, %v309_v5, %v253_v59 }
  0xb1   :  { %v251_v60 = vpop.permute.xlu0 %250 }
  0xb2   :  { %v317_v4 = vsel %vm316_vm6, %v308_v9, %v251_v60 }
  0xb3   :  { %v257_v61 = vpop.permute.xlu1 %256 }
  0xb4   :  { %v320_v16 = vsel %vm316_vm6, %v311_v40, %v257_v61 }
  0xb5   :  { %v255_v62 = vpop.permute.xlu0 %254 }
  0xb6   :  { %v319_v20 = vsel %vm316_vm6, %v310_v17, %v255_v62 }
  0xb7   :  { %v261_v63 = vpop.permute.xlu1 %260 }
  0xb8   :  { %v322_v25 = vsel %vm316_vm6, %v313_v21, %v261_v63 }
  0xb9   :  { %v259_v0 = vpop.permute.xlu0 %258 }
  0xba   :  { %v321_v30 = vsel %vm316_vm6, %v312_v26, %v259_v0 }
  0xbb   :  { %v265_v1 = vpop.permute.xlu1 %264 }
  0xbc   :  { %v324_v34 = vsel %vm316_vm6, %v315_v31, %v265_v1 }
  0xbd   :  { %v263_v3 = vpop.permute.xlu0 %262 }
  0xbe   :  { %v323_v38 = vsel %vm316_vm6, %v314_v36, %v263_v3 }
  0xbf   :  { %v277_v8 = vpop.permute.xlu1 %276 }
  0xc0   :  { %v327_v10 = vsel %vm325_vm7, %v318_v7, %v277_v8 }
  0xc1   :  { %336 = vst.msk [vmem:[%s569_s1 + $0x8] sm:$0x1f] %vm334_vm8, %v327_v10  ;;  %v275_v12 = vpop.permute.xlu0 %274 }
  0xc2   :  { %v326_v13 = vsel %vm325_vm7, %v317_v4, %v275_v12 }
  0xc3   :  { %335 = vst.msk [vmem:[%s569_s1] sm:$0x1f] %vm334_vm8, %v326_v13  ;;  %v281_v51 = vpop.permute.xlu1 %280 }
  0xc4   :  { %v329_v18 = vsel %vm325_vm7, %v320_v16, %v281_v51 }
  0xc5   :  { %338 = vst.msk [vmem:[%s569_s1 + $0x18] sm:$0x1f] %vm334_vm8, %v329_v18  ;;  %v279_v24 = vpop.permute.xlu0 %278 }
  0xc6   :  { %v328_v22 = vsel %vm325_vm7, %v319_v20, %v279_v24 }
  0xc7   :  { %337 = vst.msk [vmem:[%s569_s1 + $0x10] sm:$0x1f] %vm334_vm8, %v328_v22  ;;  %v285_v15 = vpop.permute.xlu1 %284 }
  0xc8   :  { %v331_v28 = vsel %vm325_vm7, %v322_v25, %v285_v15 }
  0xc9   :  { %340 = vst.msk [vmem:[%s569_s1 + $0x28] sm:$0x1f] %vm334_vm8, %v331_v28  ;;  %v283_v27 = vpop.permute.xlu0 %282 }
  0xca   :  { %v330_v32 = vsel %vm325_vm7, %v321_v30, %v283_v27 }
  0xcb   :  { %339 = vst.msk [vmem:[%s569_s1 + $0x20] sm:$0x1f] %vm334_vm8, %v330_v32  ;;  %v289_v35 = vpop.permute.xlu1 %288 }
  0xcc   :  { %v333_v37 = vsel %vm325_vm7, %v324_v34, %v289_v35 }
  0xcd   :  { %342 = vst.msk [vmem:[%s569_s1 + $0x38] sm:$0x1f] %vm334_vm8, %v333_v37  ;;  %v287_v39 = vpop.permute.xlu0 %286 }
  0xce   :  { %v332_v41 = vsel %vm325_vm7, %v323_v38, %v287_v39 }
  0xcf   :  { %341 = vst.msk [vmem:[%s569_s1 + $0x30] sm:$0x1f] %vm334_vm8, %v332_v41 }
  0xd0   :  { %347 = vsyncpa [#allocation3], 1 }

</bundles_post_ra>
